<compile_context>
chip_gen: v6e
topology: v6e:2x2x1
jax: 0.10.0
libtpu: 0.0.40
codegen_flags: <defaults>
</compile_context>

<pallas_src>
import math
import functools

import jax
import jax.numpy as jnp
from jax import lax
from jax.experimental import pallas as pl
from jax.experimental.pallas import tpu as pltpu

_LANE = 128
_SUBLANE = 8
_EPS = 1e-12  # TODO(synk): Utils.L2Norm source not provided; assuming F.normalize(dim=-1, eps=1e-12).


def _round_up(x, m):
    return ((x + m - 1) // m) * m


def _vmem_capacity_bytes():
    try:
        return int(pltpu.get_tpu_info().vmem_capacity_bytes)
    except Exception:
        return 64 << 20        # conservative fallback: v7x per-TensorCore VMEM


# ---------------------------------------------------------------------------
# Fused Pallas kernel: [L2 norm?] -> linear -> [ReLU?]  repeated for all layers
# ---------------------------------------------------------------------------
def _fused_mlp_kernel(*refs, n_layers, l2_flags, relu_flags):
    # refs = (x_ref, w0_ref, b0_ref, w1_ref, b1_ref, ..., o_ref)
    x_ref = refs[0]
    o_ref = refs[-1]
    wb = refs[1:-1]

    act_dtype = x_ref.dtype                            # bf16 by default (f32 if requested)
    y = x_ref[...]                                     # (tb, in_pad), stays VMEM/vreg resident

    for i in range(n_layers):                          # statically unrolled over layers
        w_ref = wb[2 * i]                              # (in_pad_i, out_pad_i), pre-transposed
        b_ref = wb[2 * i + 1]                          # (1, out_pad_i)

        if l2_flags[i]:
            # x / max(||x||_2, eps)  ==  x * rsqrt(max(ss, eps^2))  for ||x|| >= eps.
            yf = y.astype(jnp.float32)                 # reduction in f32
            ss = jnp.sum(yf * yf, axis=-1, keepdims=True)
            inv = lax.rsqrt(jnp.maximum(ss, _EPS * _EPS))   # EUP rsqrt, no VPU divide
            y = (yf * inv).astype(act_dtype)

        w = w_ref[...]
        # Native-dtype MXU matmul (bf16 x bf16 by default) with f32 accumulation.
        acc = jnp.dot(y.astype(w.dtype), w, preferred_element_type=jnp.float32)
        acc = acc + b_ref[...].astype(jnp.float32)     # bias / ReLU math in f32
        if relu_flags[i]:
            acc = jnp.maximum(acc, 0.0)

        if i + 1 < n_layers:
            y = acc.astype(act_dtype)                  # keep inter-layer activation narrow
        else:
            o_ref[...] = acc.astype(o_ref.dtype)       # lane-dense (multiple-of-128) store


# ---------------------------------------------------------------------------
# Parameter initialization (matches ParameterFreeLinear.reset_tensors)
# ---------------------------------------------------------------------------
def init_pf_linear(key, in_features, out_features):
    # kaiming_uniform_(a=sqrt(5)) on an (out, in) weight:
    #   gain = sqrt(2/(1+a^2)) = sqrt(1/3); bound = gain*sqrt(3/fan_in) = 1/sqrt(fan_in)
    kw, kb = jax.random.split(key)
    bound = 1.0 / math.sqrt(in_features)
    w = jax.random.uniform(kw, (out_features, in_features), jnp.float32,
                           minval=-bound, maxval=bound)
    b = jax.random.uniform(kb, (out_features,), jnp.float32,
                           minval=-bound, maxval=bound)
    return w, b


def make_parameter_free_mlp(key, in_dim, out_dim, hidden_dim=512, depth=0,
                            l2_norm_1st=False, l2_norm_pen=False,
                            param_dtype=jnp.bfloat16, batch_tile=256):
    """Build the fused-MLP forward fn.  param_dtype=jnp.bfloat16 (default) uses the native
    bf16 MXU path with f32 accumulation; pass jnp.float32 for bit-exact f32 math."""
    n_layers = depth + 1
    keys = jax.random.split(key, n_layers)

    dims = [(in_dim if i == 0 else hidden_dim, hidden_dim if i < depth else out_dim)
            for i in range(n_layers)]

    # Raw PyTorch-layout parameters (W: (out, in), b: (out,)) -- kept for the reference check.
    raw_params = [init_pf_linear(keys[i], fin, fout) for i, (fin, fout) in enumerate(dims)]

    # Pre-transpose + lane-pad ONCE (outside the hot path): W -> (in_pad, out_pad), b -> (1, out_pad).
    itemsize = jnp.dtype(param_dtype).itemsize
    flat_padded, layer_in_p, layer_out_p = [], [], []
    for (fin, fout), (w, b) in zip(dims, raw_params):
        fin_p, fout_p = _round_up(fin, _LANE), _round_up(fout, _LANE)
        wt = jnp.zeros((fin_p, fout_p), param_dtype).at[:fin, :fout].set(
            jnp.transpose(w).astype(param_dtype))
        bp = jnp.zeros((1, fout_p), param_dtype).at[0, :fout].set(b.astype(param_dtype))
        flat_padded += [wt, bp]
        layer_in_p.append(fin_p)
        layer_out_p.append(fout_p)

    l2_flags = tuple((l2_norm_1st and i == 0) or (l2_norm_pen and i == depth)
                     for i in range(n_layers))
    relu_flags = tuple(i < depth for i in range(n_layers))
    in_pad, out_pad = layer_in_p[0], layer_out_p[-1]
    max_feat_pad = max([in_pad] + layer_out_p)

    kernel = functools.partial(_fused_mlp_kernel, n_layers=n_layers,
                               l2_flags=l2_flags, relu_flags=relu_flags)

    weight_bytes = sum((kin * kout + kout) * itemsize
                       for kin, kout in zip(layer_in_p, layer_out_p))
    vmem_cap = _vmem_capacity_bytes()

    # TODO(synk): add K/N grid tiling (pl.when-zeroed f32 VMEM accumulator) once the
    # single-buffered bf16 weights exceed ~1/3 of the VMEM budget (hidden_dim in the low
    # thousands on v7x); until then whole-layer weights stay VMEM-resident.

    def _choose_batch_tile(B):
        bt = _round_up(max(int(batch_tile), _SUBLANE), _SUBLANE)   # always a multiple of 8
        b8 = _round_up(B, _SUBLANE)
        tb = min(bt, b8)
        # v7x has 2 TensorCores; with a single grid step one core idles.  Ensure the
        # "parallel" batch axis has >= 2 steps whenever there are >= 2 sublane tiles of rows.
        if b8 >= 2 * _SUBLANE:
            tb = min(tb, _round_up((b8 + 1) // 2, _SUBLANE))
        return tb, _round_up(B, tb)

    def _build_forward(single_buffer_weights):
        weight_bufs = 1 if single_buffer_weights else 2

        @jax.jit
        def forward_impl(params, *xs):
            y = xs[0] if len(xs) == 1 else jnp.concatenate(xs, axis=-1)
            if y.shape[-1] != in_dim:
                raise ValueError(
                    f"concatenated input dim {y.shape[-1]} != in_dim {in_dim}")
            out_dtype = y.dtype
            B = y.shape[0]
            tb, b_pad = _choose_batch_tile(B)

            # Cast to the compute dtype (bf16 by default -> native MXU path) and pad only
            # the edges actually needed; no full zeros+scatter copy of the activations.
            y = y.astype(param_dtype)
            if b_pad != B or in_pad != in_dim:
                y = jnp.pad(y, ((0, b_pad - B), (0, in_pad - in_dim)))
            # TODO(synk): pass each x_i as its own BlockSpec input and split the first-layer
            # matmul per segment to also elide the concat copy for multi-input calls.

            wspec_kw = ({"pipeline_mode": pl.Buffered(1)}
                        if single_buffer_weights else {})
            in_specs = [pl.BlockSpec((tb, in_pad), lambda i: (i, 0))]
            for kin, kout in zip(layer_in_p, layer_out_p):
                # Constant index_map -> weights/biases stay VMEM-resident across grid steps.
                in_specs.append(pl.BlockSpec((kin, kout), lambda i: (0, 0), **wspec_kw))
                in_specs.append(pl.BlockSpec((1, kout), lambda i: (0, 0), **wspec_kw))

            # VMEM budget: resident weights (x1 or x2 buffers) + double-buffered x/out tiles
            # + ~2 live f32 intermediates, clamped to ~85% of this generation's VMEM.
            act_bytes = 2 * tb * (in_pad * itemsize
                                  + out_pad * jnp.dtype(out_dtype).itemsize)
            interm_bytes = 2 * tb * max_feat_pad * 4
            needed = weight_bufs * weight_bytes + act_bytes + interm_bytes + (4 << 20)
            vmem_limit = int(min(max(needed, 32 << 20), int(0.85 * vmem_cap)))

            out_p = pl.pallas_call(
                kernel,
                out_shape=jax.ShapeDtypeStruct((b_pad, out_pad), out_dtype),
                grid=(b_pad // tb,),
                in_specs=in_specs,
                out_specs=pl.BlockSpec((tb, out_pad), lambda i: (i, 0)),
                compiler_params=pltpu.CompilerParams(
                    dimension_semantics=("parallel",),   # batch tiles sharded across TCs (v7x)
                    vmem_limit_bytes=vmem_limit),
            )(y, *params)

            return out_p[:B, :out_dim]

        return forward_impl

    fwd_single = _build_forward(True)
    fwd_double = _build_forward(False)
    params_tuple = tuple(flat_padded)
    _state = {"single_ok": True}

    def forward(*xs):
        # Prefer single-buffered resident weights (halves weight VMEM, key on v7x's 64 MiB);
        # fall back to default double buffering if this Pallas version rejects pl.Buffered(1).
        if _state["single_ok"]:
            try:
                return fwd_single(params_tuple, *xs)
            except Exception:
                _state["single_ok"] = False
        return fwd_double(params_tuple, *xs)

    return forward, raw_params


# ---------------------------------------------------------------------------
# Pure-JAX reference (for correctness check)
# ---------------------------------------------------------------------------
def reference_forward(params, *xs, depth, l2_norm_1st, l2_norm_pen):
    y = jnp.concatenate(xs, axis=-1).astype(jnp.float32)
    for i, (w, b) in enumerate(params):
        if (l2_norm_1st and i == 0) or (l2_norm_pen and i == depth):
            n = jnp.sqrt(jnp.sum(y * y, axis=-1, keepdims=True))
            y = y / jnp.maximum(n, _EPS)
        y = y @ w.T + b
        if i < depth:
            y = jnp.maximum(y, 0.0)
    return y


if __name__ == "__main__":
    key = jax.random.PRNGKey(0)
    k_x1, k_x2, k_params = jax.random.split(key, 3)

    # Small shapes: forward takes *x and concatenates along the last axis.
    B = 8
    x1 = jax.random.normal(k_x1, (B, 16), jnp.float32)
    x2 = jax.random.normal(k_x2, (B, 16), jnp.float32)

    in_dim, out_dim, hidden_dim, depth = 32, 16, 32, 1
    l2_norm_1st, l2_norm_pen = True, False

    # 1) f32 params/activations: strict check against the pure-JAX reference.
    mlp_f32, raw_params = make_parameter_free_mlp(
        k_params, in_dim, out_dim, hidden_dim=hidden_dim, depth=depth,
        l2_norm_1st=l2_norm_1st, l2_norm_pen=l2_norm_pen,
        param_dtype=jnp.float32)
    out = jax.block_until_ready(mlp_f32(x1, x2))
    ref = reference_forward(raw_params, x1, x2, depth=depth,
                            l2_norm_1st=l2_norm_1st, l2_norm_pen=l2_norm_pen)
    assert out.shape == (B, out_dim), out.shape
    assert jnp.allclose(out, ref, atol=1e-4, rtol=1e-4), (
        "f32 mismatch vs reference, max abs err = %s" % jnp.max(jnp.abs(out - ref)))

    # 2) default bf16 params/activations (native MXU path, f32 accumulation); checked
    #    against the f32 reference with a bf16-appropriate tolerance.
    mlp_bf16, raw_params_bf = make_parameter_free_mlp(
        k_params, in_dim, out_dim, hidden_dim=hidden_dim, depth=depth,
        l2_norm_1st=l2_norm_1st, l2_norm_pen=l2_norm_pen)
    out_bf = jax.block_until_ready(mlp_bf16(x1, x2))
    ref_bf = reference_forward(raw_params_bf, x1, x2, depth=depth,
                               l2_norm_1st=l2_norm_1st, l2_norm_pen=l2_norm_pen)
    assert out_bf.shape == (B, out_dim), out_bf.shape
    assert jnp.allclose(out_bf, ref_bf, atol=5e-2, rtol=5e-2), (
        "bf16 mismatch vs reference, max abs err = %s" % jnp.max(jnp.abs(out_bf - ref_bf)))

    # 3) ragged batch (B not a multiple of 8): exercises row padding and a multi-step grid.
    B2 = 13
    x3 = jax.random.normal(k_x2, (B2, in_dim), jnp.float32)
    out3 = jax.block_until_ready(mlp_bf16(x3))
    ref3 = reference_forward(raw_params_bf, x3, depth=depth,
                             l2_norm_1st=l2_norm_1st, l2_norm_pen=l2_norm_pen)
    assert out3.shape == (B2, out_dim), out3.shape
    assert jnp.allclose(out3, ref3, atol=5e-2, rtol=5e-2), (
        "ragged-batch mismatch vs reference, max abs err = %s"
        % jnp.max(jnp.abs(out3 - ref3)))

    print("KERNEL_OK")
</pallas_src>

<mosaic_0001>
module attributes {stable_mosaic.version = 11 : i64} {
  func.func @_fused_mlp_kernel(%arg0: i32, %arg1: memref<8x128xf32, #tpu.memory_space<vmem>>, %arg2: memref<128x128xf32, #tpu.memory_space<vmem>>, %arg3: memref<1x128xf32, #tpu.memory_space<vmem>>, %arg4: memref<128x128xf32, #tpu.memory_space<vmem>>, %arg5: memref<1x128xf32, #tpu.memory_space<vmem>>, %arg6: memref<8x128xf32, #tpu.memory_space<vmem>>) attributes {dimension_semantics = [#tpu.dimension_semantics<parallel>], iteration_bounds = array<i64: 1>, scalar_prefetch = 0 : i64, scratch_operands = 0 : i64, tpu.core_type = #tpu.core_type<tc>, window_params = [{transform_indices = @transform_0, window_bounds = array<i64: 8, 128>}, {pipeline_mode = #tpu.pipeline_mode<synchronous>, transform_indices = @transform_1, window_bounds = array<i64: 128, 128>}, {pipeline_mode = #tpu.pipeline_mode<synchronous>, transform_indices = @transform_2, window_bounds = array<i64: 1, 128>}, {pipeline_mode = #tpu.pipeline_mode<synchronous>, transform_indices = @transform_3, window_bounds = array<i64: 128, 128>}, {pipeline_mode = #tpu.pipeline_mode<synchronous>, transform_indices = @transform_4, window_bounds = array<i64: 1, 128>}, {transform_indices = @transform_5, window_bounds = array<i64: 8, 128>}]} {
    %c0 = arith.constant 0 : index
    %c0_0 = arith.constant 0 : index
    %0 = vector.load %arg1[%c0, %c0_0] : memref<8x128xf32, #tpu.memory_space<vmem>>, vector<8x128xf32>
    %1 = arith.mulf %0, %0 : vector<8x128xf32>
    %cst = arith.constant dense<0.000000e+00> : vector<8xf32>
    %2 = vector.multi_reduction <add>, %1, %cst [1] : vector<8x128xf32> to vector<8xf32>
    %3 = vector.shape_cast %2 : vector<8xf32> to vector<8x1xf32>
    %cst_1 = arith.constant 1.000000e-24 : f32
    %4 = vector.broadcast %cst_1 : f32 to vector<8x1xf32>
    %5 = arith.maximumf %3, %4 : vector<8x1xf32>
    %6 = math.rsqrt %5 : vector<8x1xf32>
    %7 = vector.broadcast %6 : vector<8x1xf32> to vector<8x128xf32>
    %8 = arith.mulf %0, %7 : vector<8x128xf32>
    %c0_2 = arith.constant 0 : index
    %c0_3 = arith.constant 0 : index
    %9 = vector.load %arg2[%c0_2, %c0_3] : memref<128x128xf32, #tpu.memory_space<vmem>>, vector<128x128xf32>
    %cst_4 = arith.constant dense<0.000000e+00> : vector<8x128xf32>
    %10 = tpu.matmul %8, %9, %cst_4 {dimension_numbers = #tpu.dot_dimension_numbers<[1], [0], [0], [1], [0, 0, 1, 1], [], []>} : vector<8x128xf32>, vector<128x128xf32>, vector<8x128xf32> -> vector<8x128xf32>
    %c0_5 = arith.constant 0 : index
    %c0_6 = arith.constant 0 : index
    %11 = vector.load %arg3[%c0_5, %c0_6] : memref<1x128xf32, #tpu.memory_space<vmem>>, vector<1x128xf32>
    %12 = vector.broadcast %11 : vector<1x128xf32> to vector<8x128xf32>
    %13 = arith.addf %10, %12 : vector<8x128xf32>
    %cst_7 = arith.constant 0.000000e+00 : f32
    %14 = vector.broadcast %cst_7 : f32 to vector<8x128xf32>
    %15 = arith.maximumf %13, %14 : vector<8x128xf32>
    %c0_8 = arith.constant 0 : index
    %c0_9 = arith.constant 0 : index
    %16 = vector.load %arg4[%c0_8, %c0_9] : memref<128x128xf32, #tpu.memory_space<vmem>>, vector<128x128xf32>
    %cst_10 = arith.constant dense<0.000000e+00> : vector<8x128xf32>
    %17 = tpu.matmul %15, %16, %cst_10 {dimension_numbers = #tpu.dot_dimension_numbers<[1], [0], [0], [1], [0, 0, 1, 1], [], []>} : vector<8x128xf32>, vector<128x128xf32>, vector<8x128xf32> -> vector<8x128xf32>
    %c0_11 = arith.constant 0 : index
    %c0_12 = arith.constant 0 : index
    %18 = vector.load %arg5[%c0_11, %c0_12] : memref<1x128xf32, #tpu.memory_space<vmem>>, vector<1x128xf32>
    %19 = vector.broadcast %18 : vector<1x128xf32> to vector<8x128xf32>
    %20 = arith.addf %17, %19 : vector<8x128xf32>
    %c0_13 = arith.constant 0 : index
    %c0_14 = arith.constant 0 : index
    %21 = vector.load %arg6[%c0_13, %c0_14] : memref<8x128xf32, #tpu.memory_space<vmem>>, vector<8x128xf32>
    tpu.vector_store %arg6[%c0_13, %c0_14], %20 {strides = array<i32>} : memref<8x128xf32, #tpu.memory_space<vmem>>, vector<8x128xf32>,
    return
  }
  func.func @transform_0(%arg0: i32) -> (i32, i32) {
    %c0_i32 = arith.constant 0 : i32
    %c0_i32_0 = arith.constant 0 : i32
    return %arg0, %c0_i32 : i32, i32
  }
  func.func @transform_1(%arg0: i32) -> (i32, i32) {
    %c0_i32 = arith.constant 0 : i32
    %c0_i32_0 = arith.constant 0 : i32
    %c0_i32_1 = arith.constant 0 : i32
    return %c0_i32, %c0_i32_0 : i32, i32
  }
  func.func @transform_2(%arg0: i32) -> (i32, i32) {
    %c0_i32 = arith.constant 0 : i32
    %c0_i32_0 = arith.constant 0 : i32
    %c0_i32_1 = arith.constant 0 : i32
    return %c0_i32, %c0_i32_0 : i32, i32
  }
  func.func @transform_3(%arg0: i32) -> (i32, i32) {
    %c0_i32 = arith.constant 0 : i32
    %c0_i32_0 = arith.constant 0 : i32
    %c0_i32_1 = arith.constant 0 : i32
    return %c0_i32, %c0_i32_0 : i32, i32
  }
  func.func @transform_4(%arg0: i32) -> (i32, i32) {
    %c0_i32 = arith.constant 0 : i32
    %c0_i32_0 = arith.constant 0 : i32
    %c0_i32_1 = arith.constant 0 : i32
    return %c0_i32, %c0_i32_0 : i32, i32
  }
  func.func @transform_5(%arg0: i32) -> (i32, i32) {
    %c0_i32 = arith.constant 0 : i32
    %c0_i32_0 = arith.constant 0 : i32
    return %arg0, %c0_i32 : i32, i32
  }
}

module attributes {stable_mosaic.version = 11 : i64} {
  func.func @_fused_mlp_kernel(%arg0: i32, %arg1: memref<8x128xf32, #tpu.memory_space<vmem>>, %arg2: memref<128x128xf32, #tpu.memory_space<vmem>>, %arg3: memref<1x128xf32, #tpu.memory_space<vmem>>, %arg4: memref<128x128xf32, #tpu.memory_space<vmem>>, %arg5: memref<1x128xf32, #tpu.memory_space<vmem>>, %arg6: memref<8x128xf32, #tpu.memory_space<vmem>>) attributes {dimension_semantics = [#tpu.dimension_semantics<parallel>], iteration_bounds = array<i64: 1>, scalar_prefetch = 0 : i64, scratch_operands = 0 : i64, tpu.core_type = #tpu.core_type<tc>, window_params = [{transform_indices = @transform_0, window_bounds = array<i64: 8, 128>}, {pipeline_mode = #tpu.pipeline_mode<synchronous>, transform_indices = @transform_1, window_bounds = array<i64: 128, 128>}, {pipeline_mode = #tpu.pipeline_mode<synchronous>, transform_indices = @transform_2, window_bounds = array<i64: 1, 128>}, {pipeline_mode = #tpu.pipeline_mode<synchronous>, transform_indices = @transform_3, window_bounds = array<i64: 128, 128>}, {pipeline_mode = #tpu.pipeline_mode<synchronous>, transform_indices = @transform_4, window_bounds = array<i64: 1, 128>}, {transform_indices = @transform_5, window_bounds = array<i64: 8, 128>}]} {
    %c0 = arith.constant 0 : index
    %c0_0 = arith.constant 0 : index
    %0 = vector.load %arg1[%c0, %c0_0] : memref<8x128xf32, #tpu.memory_space<vmem>>, vector<8x128xf32>
    %1 = arith.mulf %0, %0 : vector<8x128xf32>
    %cst = arith.constant dense<0.000000e+00> : vector<8xf32>
    %2 = vector.multi_reduction <add>, %1, %cst [1] : vector<8x128xf32> to vector<8xf32>
    %3 = vector.shape_cast %2 : vector<8xf32> to vector<8x1xf32>
    %cst_1 = arith.constant 1.000000e-24 : f32
    %4 = vector.broadcast %cst_1 : f32 to vector<8x1xf32>
    %5 = arith.maximumf %3, %4 : vector<8x1xf32>
    %6 = math.rsqrt %5 : vector<8x1xf32>
    %7 = vector.broadcast %6 : vector<8x1xf32> to vector<8x128xf32>
    %8 = arith.mulf %0, %7 : vector<8x128xf32>
    %c0_2 = arith.constant 0 : index
    %c0_3 = arith.constant 0 : index
    %9 = vector.load %arg2[%c0_2, %c0_3] : memref<128x128xf32, #tpu.memory_space<vmem>>, vector<128x128xf32>
    %cst_4 = arith.constant dense<0.000000e+00> : vector<8x128xf32>
    %10 = tpu.matmul %8, %9, %cst_4 {dimension_numbers = #tpu.dot_dimension_numbers<[1], [0], [0], [1], [0, 0, 1, 1], [], []>} : vector<8x128xf32>, vector<128x128xf32>, vector<8x128xf32> -> vector<8x128xf32>
    %c0_5 = arith.constant 0 : index
    %c0_6 = arith.constant 0 : index
    %11 = vector.load %arg3[%c0_5, %c0_6] : memref<1x128xf32, #tpu.memory_space<vmem>>, vector<1x128xf32>
    %12 = vector.broadcast %11 : vector<1x128xf32> to vector<8x128xf32>
    %13 = arith.addf %10, %12 : vector<8x128xf32>
    %cst_7 = arith.constant 0.000000e+00 : f32
    %14 = vector.broadcast %cst_7 : f32 to vector<8x128xf32>
    %15 = arith.maximumf %13, %14 : vector<8x128xf32>
    %c0_8 = arith.constant 0 : index
    %c0_9 = arith.constant 0 : index
    %16 = vector.load %arg4[%c0_8, %c0_9] : memref<128x128xf32, #tpu.memory_space<vmem>>, vector<128x128xf32>
    %cst_10 = arith.constant dense<0.000000e+00> : vector<8x128xf32>
    %17 = tpu.matmul %15, %16, %cst_10 {dimension_numbers = #tpu.dot_dimension_numbers<[1], [0], [0], [1], [0, 0, 1, 1], [], []>} : vector<8x128xf32>, vector<128x128xf32>, vector<8x128xf32> -> vector<8x128xf32>
    %c0_11 = arith.constant 0 : index
    %c0_12 = arith.constant 0 : index
    %18 = vector.load %arg5[%c0_11, %c0_12] : memref<1x128xf32, #tpu.memory_space<vmem>>, vector<1x128xf32>
    %19 = vector.broadcast %18 : vector<1x128xf32> to vector<8x128xf32>
    %20 = arith.addf %17, %19 : vector<8x128xf32>
    %c0_13 = arith.constant 0 : index
    %c0_14 = arith.constant 0 : index
    %21 = vector.load %arg6[%c0_13, %c0_14] : memref<8x128xf32, #tpu.memory_space<vmem>>, vector<8x128xf32>
    tpu.vector_store %arg6[%c0_13, %c0_14], %20 {strides = array<i32>} : memref<8x128xf32, #tpu.memory_space<vmem>>, vector<8x128xf32>,
    return
  }
  func.func @transform_0(%arg0: i32) -> (i32, i32) {
    %c0_i32 = arith.constant 0 : i32
    %c0_i32_0 = arith.constant 0 : i32
    return %arg0, %c0_i32 : i32, i32
  }
  func.func @transform_1(%arg0: i32) -> (i32, i32) {
    %c0_i32 = arith.constant 0 : i32
    %c0_i32_0 = arith.constant 0 : i32
    %c0_i32_1 = arith.constant 0 : i32
    return %c0_i32, %c0_i32_0 : i32, i32
  }
  func.func @transform_2(%arg0: i32) -> (i32, i32) {
    %c0_i32 = arith.constant 0 : i32
    %c0_i32_0 = arith.constant 0 : i32
    %c0_i32_1 = arith.constant 0 : i32
    return %c0_i32, %c0_i32_0 : i32, i32
  }
  func.func @transform_3(%arg0: i32) -> (i32, i32) {
    %c0_i32 = arith.constant 0 : i32
    %c0_i32_0 = arith.constant 0 : i32
    %c0_i32_1 = arith.constant 0 : i32
    return %c0_i32, %c0_i32_0 : i32, i32
  }
  func.func @transform_4(%arg0: i32) -> (i32, i32) {
    %c0_i32 = arith.constant 0 : i32
    %c0_i32_0 = arith.constant 0 : i32
    %c0_i32_1 = arith.constant 0 : i32
    return %c0_i32, %c0_i32_0 : i32, i32
  }
  func.func @transform_5(%arg0: i32) -> (i32, i32) {
    %c0_i32 = arith.constant 0 : i32
    %c0_i32_0 = arith.constant 0 : i32
    return %arg0, %c0_i32 : i32, i32
  }
}

</mosaic_0001>

<bundles_post_ra>
// kernel: forward_impl.1
= control target key start
LH: loop header
LB: loop body
LE: loop exit
PB: predicated region body
PF: predicated region fallthrough
CT: control target
= control target key end

     0   :  { %10 = vsyncpa [#allocation3], 0  ;;  %s535_s0 = inlined_call_operand.vmem [shape: f32[8,128], index: 0, kind: input, shape index: {}]   ;;  %s536_s1 = inlined_call_operand.hbm [shape: f32[128,128], index: 1, kind: input, shape index: {}]   ;;  %s537_s2 = inlined_call_operand.vmem [shape: f32[1,128], index: 2, kind: input, shape index: {}]   ;;  %s538_s3 = inlined_call_operand.hbm [shape: f32[128,128], index: 3, kind: input, shape index: {}]   ;;  %s539_s4 = inlined_call_operand.vmem [shape: f32[1,128], index: 4, kind: input, shape index: {}]   ;;  %s540_s5 = inlined_call_operand.hbm [shape: f32[8,128], index: 5, kind: output, shape index: {}]  }
   0x1   :  { %11 = vsyncpa [#allocation6], 0 }
   0x2   :  { %12 = vsyncpa [#allocation4], 0  ;;  %s441_s18 = smov [#allocation2]  }
   0x3   :  { %s20_s19 = sshll.u32 %s441_s18, 4  ;;  %s21_s19 = int_to_ptr.vmem [resolvable:$true] %s20_s19 }
   0x4   :  { %s383_s20 = scalar_lea.vmem %s21_s19, 2048  ;;  %p388_p1 = scmp.lt.s32.totalorder %s21_s19, %s21_s19 }
   0x5   :  { %p384_p0 = scmp.ne.s32.totalorder %s21_s19, %s383_s20  ;;  %p389_p2 = scmp.lt.s32.totalorder %s383_s20, %s383_s20 }
   0x7   :  { %p390_p3 = por %p389_p2, %p388_p1 }
   0x9   :  { %p391_p4 = pnand %p390_p3, %p384_p0 }
   0xb   :  { %394 = shalt.err (!%p391_p4)
}
   0xc   :  { %s442_s21 = smov 128   ;;  %s443_s22 = smov 8  }
   0xd   :  { %26 = dma.hbm_to_vmem [thread:$0]  %s536_s1, 2048, %s21_s19, [#allocation3], %s442_s21, %s442_s21, %s443_s22  }
   0xe   :  { %s444_s25 = smov [#allocation5]  }
   0xf   :  { %s34_s26 = sshll.u32 %s444_s25, 4  ;;  %s35_s26 = int_to_ptr.vmem [resolvable:$true] %s34_s26 }
  0x10   :  { %s403_s27 = scalar_lea.vmem %s35_s26, 2048  ;;  %p408_p6 = scmp.lt.s32.totalorder %s35_s26, %s35_s26 }
  0x11   :  { %p404_p5 = scmp.ne.s32.totalorder %s35_s26, %s403_s27  ;;  %p409_p7 = scmp.lt.s32.totalorder %s403_s27, %s403_s27 }
  0x13   :  { %p410_p8 = por %p409_p7, %p408_p6 }
  0x15   :  { %p411_p9 = pnand %p410_p8, %p404_p5 }
  0x17   :  { %414 = shalt.err (!%p411_p9)
}
  0x18   :  { %40 = dma.hbm_to_vmem [thread:$0]  %s538_s3, 2048, %s35_s26, [#allocation6], %s442_s21, %s442_s21, %s443_s22  }
  0x19   :  { %435 = dma.done.wait [#allocation3], 2048  }
  0x1a   :  { %436 = vsyncadd [#allocation3], 4294965248 }
  0x1b   :  { %437 = dma.done.wait [#allocation6], 2048  }
  0x1c   :  { %438 = vsyncadd [#allocation6], 4294965248  ;;  %v445_v0 = vmov 0.0   ;;  %v489_v1 = vld [vmem:[%s535_s0] sm:$0xff]  ;;  %v71_v2 = vld [vmem:[#allocation2 + $0x78] sm:$0xff]  ;;  %vm446_vm0 = vmmov 0  }
  0x1d   :  { %296 = vmatprep.subr.mxu0 %v445_v0  ;;  %331 = vmatprep.subr.mxu1 %v445_v0  ;;  %v70_v3 = vld [vmem:[#allocation2 + $0x70] sm:$0xff]  ;;  %v50_v4 = vmul.f32 %v489_v1, %v489_v1  ;;  %v69_v5 = vld [vmem:[#allocation2 + $0x68] sm:$0xff]  ;;  %v68_v6 = vld [vmem:[#allocation2 + $0x60] sm:$0xff]  ;;  %s447_s8 = smov [#allocation7]  }
  0x1e   :  { %297 = vmatpush3.msra.mxu0 %v71_v2  ;;  %v67_v7 = vld [vmem:[#allocation2 + $0x58] sm:$0xff]  ;;  %v66_v8 = vld [vmem:[#allocation2 + $0x50] sm:$0xff]  ;;  %v65_v9 = vld [vmem:[#allocation2 + $0x48] sm:$0xff]  ;;  %328 = vmatprep.mubr.msk.f32.mxu0 %vm446_vm0, %v445_v0  ;;  %s250_s9 = sshll.u32 %s447_s8, 4  ;;  %s251_s9 = int_to_ptr.vmem [resolvable:$true] %s250_s9 }
  0x1f   :  { %298 = vmatprep.subr.mxu0 %v445_v0  ;;  %51 = vadd.xlane.f32.xlu0 %v50_v4  ;;  %v64_v10 = vld [vmem:[#allocation2 + $0x40] sm:$0xff]  ;;  %v63_v11 = vld [vmem:[#allocation2 + $0x38] sm:$0xff]  ;;  %v62_v12 = vld [vmem:[#allocation2 + $0x30] sm:$0xff]  ;;  %s415_s10 = scalar_lea.vmem %s251_s9, 128  ;;  %p420_p11 = scmp.lt.s32.totalorder %s251_s9, %s251_s9 }
  0x20   :  { %299 = vmatpush3.msra.mxu0 %v70_v3  ;;  %363 = vmatprep.mubr.msk.f32.mxu1 %vm446_vm0, %v445_v0  ;;  %v61_v13 = vld [vmem:[#allocation2 + $0x28] sm:$0xff]  ;;  %v60_v14 = vld [vmem:[#allocation2 + $0x20] sm:$0xff]  ;;  %v59_v15 = vld [vmem:[#allocation2 + $0x18] sm:$0xff]  ;;  %p416_p10 = scmp.ne.s32.totalorder %s251_s9, %s415_s10  ;;  %p421_p12 = scmp.lt.s32.totalorder %s415_s10, %s415_s10 }
  0x21   :  { %300 = vmatprep.subr.mxu0 %v445_v0  ;;  %v58_v16 = vld [vmem:[#allocation2 + $0x10] sm:$0xff]  ;;  %v57_v17 = vld [vmem:[#allocation2 + $0x8] sm:$0xff]  ;;  %v56_v18 = vld [vmem:[#allocation2] sm:$0xff] }
  0x22   :  { %301 = vmatpush3.msra.mxu0 %v69_v5  ;;  %v165_v19 = vld [vmem:[#allocation5 + $0x78] sm:$0xff]  ;;  %v164_v20 = vld [vmem:[#allocation5 + $0x70] sm:$0xff]  ;;  %v163_v21 = vld [vmem:[#allocation5 + $0x68] sm:$0xff]  ;;  %p422_p13 = por %p421_p12, %p420_p11 }
  0x23   :  { %302 = vmatprep.subr.mxu0 %v445_v0  ;;  %332 = vmatpush3.msra.mxu1 %v165_v19  ;;  %v162_v22 = vld [vmem:[#allocation5 + $0x60] sm:$0xff]  ;;  %v161_v23 = vld [vmem:[#allocation5 + $0x58] sm:$0xff]  ;;  %v160_v24 = vld [vmem:[#allocation5 + $0x50] sm:$0xff] }
  0x24   :  { %303 = vmatpush3.msra.mxu0 %v68_v6  ;;  %333 = vmatprep.subr.mxu1 %v445_v0  ;;  %v159_v25 = vld [vmem:[#allocation5 + $0x48] sm:$0xff]  ;;  %v158_v26 = vld [vmem:[#allocation5 + $0x40] sm:$0xff]  ;;  %v157_v27 = vld [vmem:[#allocation5 + $0x38] sm:$0xff]  ;;  %p423_p0 = pnand %p422_p13, %p416_p10 }
  0x25   :  { %304 = vmatprep.subr.mxu0 %v445_v0  ;;  %334 = vmatpush3.msra.mxu1 %v164_v20  ;;  %v156_v28 = vld [vmem:[#allocation5 + $0x30] sm:$0xff]  ;;  %v155_v29 = vld [vmem:[#allocation5 + $0x28] sm:$0xff]  ;;  %v154_v30 = vld [vmem:[#allocation5 + $0x20] sm:$0xff] }
  0x26   :  { %305 = vmatpush3.msra.mxu0 %v67_v7  ;;  %335 = vmatprep.subr.mxu1 %v445_v0  ;;  %v153_v31 = vld [vmem:[#allocation5 + $0x18] sm:$0xff]  ;;  %v152_v36 = vld [vmem:[#allocation5 + $0x10] sm:$0xff]  ;;  %v151_v37 = vld [vmem:[#allocation5 + $0x8] sm:$0xff] }
  0x27   :  { %306 = vmatprep.subr.mxu0 %v445_v0  ;;  %336 = vmatpush3.msra.mxu1 %v163_v21  ;;  %v150_v38 = vld [vmem:[#allocation5] sm:$0xff] }
  0x28   :  { %307 = vmatpush3.msra.mxu0 %v66_v8  ;;  %337 = vmatprep.subr.mxu1 %v445_v0  ;;  %v260_v39 = vld [vmem:[%s537_s2] ss:$0 sm:$0xff] }
  0x29   :  { %308 = vmatprep.subr.mxu0 %v445_v0  ;;  %338 = vmatpush3.msra.mxu1 %v162_v22  ;;  %v261_v44 = vld [vmem:[%s539_s4] ss:$0 sm:$0xff] }
  0x2a   :  { %309 = vmatpush3.msra.mxu0 %v65_v9  ;;  %339 = vmatprep.subr.mxu1 %v445_v0 }
  0x2b   :  { %310 = vmatprep.subr.mxu0 %v445_v0  ;;  %340 = vmatpush3.msra.mxu1 %v161_v23 }
  0x2c   :  { %311 = vmatpush3.msra.mxu0 %v64_v10  ;;  %341 = vmatprep.subr.mxu1 %v445_v0 }
  0x2d   :  { %312 = vmatprep.subr.mxu0 %v445_v0  ;;  %342 = vmatpush3.msra.mxu1 %v160_v24 }
  0x2e   :  { %313 = vmatpush3.msra.mxu0 %v63_v11  ;;  %343 = vmatprep.subr.mxu1 %v445_v0 }
  0x2f   :  { %314 = vmatprep.subr.mxu0 %v445_v0  ;;  %344 = vmatpush3.msra.mxu1 %v159_v25 }
  0x30   :  { %315 = vmatpush3.msra.mxu0 %v62_v12  ;;  %345 = vmatprep.subr.mxu1 %v445_v0 }
  0x31   :  { %316 = vmatprep.subr.mxu0 %v445_v0  ;;  %346 = vmatpush3.msra.mxu1 %v158_v26 }
  0x32   :  { %317 = vmatpush3.msra.mxu0 %v61_v13  ;;  %347 = vmatprep.subr.mxu1 %v445_v0 }
  0x33   :  { %318 = vmatprep.subr.mxu0 %v445_v0  ;;  %348 = vmatpush3.msra.mxu1 %v157_v27 }
  0x34   :  { %319 = vmatpush3.msra.mxu0 %v60_v14  ;;  %349 = vmatprep.subr.mxu1 %v445_v0 }
  0x35   :  { %320 = vmatprep.subr.mxu0 %v445_v0  ;;  %350 = vmatpush3.msra.mxu1 %v156_v28 }
  0x36   :  { %321 = vmatpush3.msra.mxu0 %v59_v15  ;;  %351 = vmatprep.subr.mxu1 %v445_v0 }
  0x37   :  { %322 = vmatprep.subr.mxu0 %v445_v0  ;;  %352 = vmatpush3.msra.mxu1 %v155_v29 }
  0x38   :  { %323 = vmatpush3.msra.mxu0 %v58_v16  ;;  %353 = vmatprep.subr.mxu1 %v445_v0 }
  0x39   :  { %324 = vmatprep.subr.mxu0 %v445_v0  ;;  %354 = vmatpush3.msra.mxu1 %v154_v30 }
  0x3a   :  { %325 = vmatpush3.msra.mxu0 %v57_v17  ;;  %355 = vmatprep.subr.mxu1 %v445_v0 }
  0x3b   :  { %326 = vmatprep.subr.mxu0 %v445_v0  ;;  %356 = vmatpush3.msra.mxu1 %v153_v31 }
  0x3c   :  { %327 = vmatpush3.msra.mxu0 %v56_v18  ;;  %357 = vmatprep.subr.mxu1 %v445_v0 }
  0x3d   :  { %358 = vmatpush3.msra.mxu1 %v152_v36 }
  0x3e   :  { %359 = vmatprep.subr.mxu1 %v445_v0 }
  0x3f   :  { %360 = vmatpush3.msra.mxu1 %v151_v37 }
  0x40   :  { %361 = vmatprep.subr.mxu1 %v445_v0 }
  0x41   :  { %362 = vmatpush3.msra.mxu1 %v150_v38 }
  0xa8   :  { %v52_v32 = vpop.xlane.xlu0 %51 }
  0xa9   :  { %v53_v33 = vmax.f32 %v52_v32, 1e-24 }
  0xab   :  { %373 = vrsqrt.f32 %v53_v33 }
  0xb8   :  { %v374_v34 = vpop.eup %373 }
  0xb9   :  { %v55_v35 = vmul.f32 %v374_v34, %v489_v1 }
  0xbb   :  { %329 = vmatmul.mubr.f32.vlgmr.msra.gmra.mxu0 %v55_v35 }
 0x17b   :  { %v145_v40 = vpop.f32.mrf.mxu0 }
 0x17c   :  { %v146_v41 = vadd.f32 %v260_v39, %v145_v40 }
 0x17d   :  { %v330_v42 = vpop.f32.mrf.mxu0 }
 0x17e   :  { %v149_v43 = vmax.f32 %v146_v41, 0.0 }
 0x180   :  { %364 = vmatmul.mubr.f32.vlgmr.msra.gmra.mxu1 %v149_v43 }
 0x240   :  { %v239_v45 = vpop.f32.mrf.mxu1 }
 0x241   :  { %v240_v46 = vadd.f32 %v261_v44, %v239_v45 }
 0x242   :  { %v365_v47 = vpop.f32.mrf.mxu1 }
 0x243   :  { %243 = vst [vmem:[#allocation7] sm:$0xff] %v240_v46 }
 0x244   :  { %426 = shalt.err (!%p423_p0)
}
 0x245   :  { %253 = dma.vmem_to_hbm [thread:$0]  %s251_s9, 128, %s540_s5, [#allocation4]  }
 0x246   :  { %439 = dma.done.wait [#allocation4], 128  }
 0x247   :  { %440 = vsyncadd [#allocation4], 4294967168 }
 0x248   :  { %257 = vsyncpa [#allocation3], 1 }
 0x249   :  { %258 = vsyncpa [#allocation6], 1 }
 0x24a   :  { %259 = vsyncpa [#allocation4], 1 }

// kernel: forward_impl.1
= control target key start
LH: loop header
LB: loop body
LE: loop exit
PB: predicated region body
PF: predicated region fallthrough
CT: control target
= control target key end

     0   :  { %10 = vsyncpa [#allocation3], 0  ;;  %s535_s0 = inlined_call_operand.vmem [shape: f32[8,128], index: 0, kind: input, shape index: {}]   ;;  %s536_s1 = inlined_call_operand.hbm [shape: f32[128,128], index: 1, kind: input, shape index: {}]   ;;  %s537_s2 = inlined_call_operand.vmem [shape: f32[1,128], index: 2, kind: input, shape index: {}]   ;;  %s538_s3 = inlined_call_operand.hbm [shape: f32[128,128], index: 3, kind: input, shape index: {}]   ;;  %s539_s4 = inlined_call_operand.vmem [shape: f32[1,128], index: 4, kind: input, shape index: {}]   ;;  %s540_s5 = inlined_call_operand.hbm [shape: f32[8,128], index: 5, kind: output, shape index: {}]  }
   0x1   :  { %11 = vsyncpa [#allocation6], 0 }
   0x2   :  { %12 = vsyncpa [#allocation4], 0  ;;  %s441_s18 = smov [#allocation2]  }
   0x3   :  { %s20_s19 = sshll.u32 %s441_s18, 4  ;;  %s21_s19 = int_to_ptr.vmem [resolvable:$true] %s20_s19 }
   0x4   :  { %s383_s20 = scalar_lea.vmem %s21_s19, 2048  ;;  %p388_p1 = scmp.lt.s32.totalorder %s21_s19, %s21_s19 }
   0x5   :  { %p384_p0 = scmp.ne.s32.totalorder %s21_s19, %s383_s20  ;;  %p389_p2 = scmp.lt.s32.totalorder %s383_s20, %s383_s20 }
   0x7   :  { %p390_p3 = por %p389_p2, %p388_p1 }
   0x9   :  { %p391_p4 = pnand %p390_p3, %p384_p0 }
   0xb   :  { %394 = shalt.err (!%p391_p4)
}
   0xc   :  { %s442_s21 = smov 128   ;;  %s443_s22 = smov 8  }
   0xd   :  { %26 = dma.hbm_to_vmem [thread:$0]  %s536_s1, 2048, %s21_s19, [#allocation3], %s442_s21, %s442_s21, %s443_s22  }
   0xe   :  { %s444_s25 = smov [#allocation5]  }
   0xf   :  { %s34_s26 = sshll.u32 %s444_s25, 4  ;;  %s35_s26 = int_to_ptr.vmem [resolvable:$true] %s34_s26 }
  0x10   :  { %s403_s27 = scalar_lea.vmem %s35_s26, 2048  ;;  %p408_p6 = scmp.lt.s32.totalorder %s35_s26, %s35_s26 }
  0x11   :  { %p404_p5 = scmp.ne.s32.totalorder %s35_s26, %s403_s27  ;;  %p409_p7 = scmp.lt.s32.totalorder %s403_s27, %s403_s27 }
  0x13   :  { %p410_p8 = por %p409_p7, %p408_p6 }
  0x15   :  { %p411_p9 = pnand %p410_p8, %p404_p5 }
  0x17   :  { %414 = shalt.err (!%p411_p9)
}
  0x18   :  { %40 = dma.hbm_to_vmem [thread:$0]  %s538_s3, 2048, %s35_s26, [#allocation6], %s442_s21, %s442_s21, %s443_s22  }
  0x19   :  { %435 = dma.done.wait [#allocation3], 2048  }
  0x1a   :  { %436 = vsyncadd [#allocation3], 4294965248 }
  0x1b   :  { %437 = dma.done.wait [#allocation6], 2048  }
  0x1c   :  { %438 = vsyncadd [#allocation6], 4294965248  ;;  %v445_v0 = vmov 0.0   ;;  %v489_v1 = vld [vmem:[%s535_s0] sm:$0xff]  ;;  %v71_v2 = vld [vmem:[#allocation2 + $0x78] sm:$0xff]  ;;  %vm446_vm0 = vmmov 0  }
  0x1d   :  { %296 = vmatprep.subr.mxu0 %v445_v0  ;;  %331 = vmatprep.subr.mxu1 %v445_v0  ;;  %v70_v3 = vld [vmem:[#allocation2 + $0x70] sm:$0xff]  ;;  %v50_v4 = vmul.f32 %v489_v1, %v489_v1  ;;  %v69_v5 = vld [vmem:[#allocation2 + $0x68] sm:$0xff]  ;;  %v68_v6 = vld [vmem:[#allocation2 + $0x60] sm:$0xff]  ;;  %s447_s8 = smov [#allocation7]  }
  0x1e   :  { %297 = vmatpush3.msra.mxu0 %v71_v2  ;;  %v67_v7 = vld [vmem:[#allocation2 + $0x58] sm:$0xff]  ;;  %v66_v8 = vld [vmem:[#allocation2 + $0x50] sm:$0xff]  ;;  %v65_v9 = vld [vmem:[#allocation2 + $0x48] sm:$0xff]  ;;  %328 = vmatprep.mubr.msk.f32.mxu0 %vm446_vm0, %v445_v0  ;;  %s250_s9 = sshll.u32 %s447_s8, 4  ;;  %s251_s9 = int_to_ptr.vmem [resolvable:$true] %s250_s9 }
  0x1f   :  { %298 = vmatprep.subr.mxu0 %v445_v0  ;;  %51 = vadd.xlane.f32.xlu0 %v50_v4  ;;  %v64_v10 = vld [vmem:[#allocation2 + $0x40] sm:$0xff]  ;;  %v63_v11 = vld [vmem:[#allocation2 + $0x38] sm:$0xff]  ;;  %v62_v12 = vld [vmem:[#allocation2 + $0x30] sm:$0xff]  ;;  %s415_s10 = scalar_lea.vmem %s251_s9, 128  ;;  %p420_p11 = scmp.lt.s32.totalorder %s251_s9, %s251_s9 }
  0x20   :  { %299 = vmatpush3.msra.mxu0 %v70_v3  ;;  %363 = vmatprep.mubr.msk.f32.mxu1 %vm446_vm0, %v445_v0  ;;  %v61_v13 = vld [vmem:[#allocation2 + $0x28] sm:$0xff]  ;;  %v60_v14 = vld [vmem:[#allocation2 + $0x20] sm:$0xff]  ;;  %v59_v15 = vld [vmem:[#allocation2 + $0x18] sm:$0xff]  ;;  %p416_p10 = scmp.ne.s32.totalorder %s251_s9, %s415_s10  ;;  %p421_p12 = scmp.lt.s32.totalorder %s415_s10, %s415_s10 }
  0x21   :  { %300 = vmatprep.subr.mxu0 %v445_v0  ;;  %v58_v16 = vld [vmem:[#allocation2 + $0x10] sm:$0xff]  ;;  %v57_v17 = vld [vmem:[#allocation2 + $0x8] sm:$0xff]  ;;  %v56_v18 = vld [vmem:[#allocation2] sm:$0xff] }
  0x22   :  { %301 = vmatpush3.msra.mxu0 %v69_v5  ;;  %v165_v19 = vld [vmem:[#allocation5 + $0x78] sm:$0xff]  ;;  %v164_v20 = vld [vmem:[#allocation5 + $0x70] sm:$0xff]  ;;  %v163_v21 = vld [vmem:[#allocation5 + $0x68] sm:$0xff]  ;;  %p422_p13 = por %p421_p12, %p420_p11 }
  0x23   :  { %302 = vmatprep.subr.mxu0 %v445_v0  ;;  %332 = vmatpush3.msra.mxu1 %v165_v19  ;;  %v162_v22 = vld [vmem:[#allocation5 + $0x60] sm:$0xff]  ;;  %v161_v23 = vld [vmem:[#allocation5 + $0x58] sm:$0xff]  ;;  %v160_v24 = vld [vmem:[#allocation5 + $0x50] sm:$0xff] }
  0x24   :  { %303 = vmatpush3.msra.mxu0 %v68_v6  ;;  %333 = vmatprep.subr.mxu1 %v445_v0  ;;  %v159_v25 = vld [vmem:[#allocation5 + $0x48] sm:$0xff]  ;;  %v158_v26 = vld [vmem:[#allocation5 + $0x40] sm:$0xff]  ;;  %v157_v27 = vld [vmem:[#allocation5 + $0x38] sm:$0xff]  ;;  %p423_p0 = pnand %p422_p13, %p416_p10 }
  0x25   :  { %304 = vmatprep.subr.mxu0 %v445_v0  ;;  %334 = vmatpush3.msra.mxu1 %v164_v20  ;;  %v156_v28 = vld [vmem:[#allocation5 + $0x30] sm:$0xff]  ;;  %v155_v29 = vld [vmem:[#allocation5 + $0x28] sm:$0xff]  ;;  %v154_v30 = vld [vmem:[#allocation5 + $0x20] sm:$0xff] }
  0x26   :  { %305 = vmatpush3.msra.mxu0 %v67_v7  ;;  %335 = vmatprep.subr.mxu1 %v445_v0  ;;  %v153_v31 = vld [vmem:[#allocation5 + $0x18] sm:$0xff]  ;;  %v152_v36 = vld [vmem:[#allocation5 + $0x10] sm:$0xff]  ;;  %v151_v37 = vld [vmem:[#allocation5 + $0x8] sm:$0xff] }
  0x27   :  { %306 = vmatprep.subr.mxu0 %v445_v0  ;;  %336 = vmatpush3.msra.mxu1 %v163_v21  ;;  %v150_v38 = vld [vmem:[#allocation5] sm:$0xff] }
  0x28   :  { %307 = vmatpush3.msra.mxu0 %v66_v8  ;;  %337 = vmatprep.subr.mxu1 %v445_v0  ;;  %v260_v39 = vld [vmem:[%s537_s2] ss:$0 sm:$0xff] }
  0x29   :  { %308 = vmatprep.subr.mxu0 %v445_v0  ;;  %338 = vmatpush3.msra.mxu1 %v162_v22  ;;  %v261_v44 = vld [vmem:[%s539_s4] ss:$0 sm:$0xff] }
  0x2a   :  { %309 = vmatpush3.msra.mxu0 %v65_v9  ;;  %339 = vmatprep.subr.mxu1 %v445_v0 }
  0x2b   :  { %310 = vmatprep.subr.mxu0 %v445_v0  ;;  %340 = vmatpush3.msra.mxu1 %v161_v23 }
  0x2c   :  { %311 = vmatpush3.msra.mxu0 %v64_v10  ;;  %341 = vmatprep.subr.mxu1 %v445_v0 }
  0x2d   :  { %312 = vmatprep.subr.mxu0 %v445_v0  ;;  %342 = vmatpush3.msra.mxu1 %v160_v24 }
  0x2e   :  { %313 = vmatpush3.msra.mxu0 %v63_v11  ;;  %343 = vmatprep.subr.mxu1 %v445_v0 }
  0x2f   :  { %314 = vmatprep.subr.mxu0 %v445_v0  ;;  %344 = vmatpush3.msra.mxu1 %v159_v25 }
  0x30   :  { %315 = vmatpush3.msra.mxu0 %v62_v12  ;;  %345 = vmatprep.subr.mxu1 %v445_v0 }
  0x31   :  { %316 = vmatprep.subr.mxu0 %v445_v0  ;;  %346 = vmatpush3.msra.mxu1 %v158_v26 }
  0x32   :  { %317 = vmatpush3.msra.mxu0 %v61_v13  ;;  %347 = vmatprep.subr.mxu1 %v445_v0 }
  0x33   :  { %318 = vmatprep.subr.mxu0 %v445_v0  ;;  %348 = vmatpush3.msra.mxu1 %v157_v27 }
  0x34   :  { %319 = vmatpush3.msra.mxu0 %v60_v14  ;;  %349 = vmatprep.subr.mxu1 %v445_v0 }
  0x35   :  { %320 = vmatprep.subr.mxu0 %v445_v0  ;;  %350 = vmatpush3.msra.mxu1 %v156_v28 }
  0x36   :  { %321 = vmatpush3.msra.mxu0 %v59_v15  ;;  %351 = vmatprep.subr.mxu1 %v445_v0 }
  0x37   :  { %322 = vmatprep.subr.mxu0 %v445_v0  ;;  %352 = vmatpush3.msra.mxu1 %v155_v29 }
  0x38   :  { %323 = vmatpush3.msra.mxu0 %v58_v16  ;;  %353 = vmatprep.subr.mxu1 %v445_v0 }
  0x39   :  { %324 = vmatprep.subr.mxu0 %v445_v0  ;;  %354 = vmatpush3.msra.mxu1 %v154_v30 }
  0x3a   :  { %325 = vmatpush3.msra.mxu0 %v57_v17  ;;  %355 = vmatprep.subr.mxu1 %v445_v0 }
  0x3b   :  { %326 = vmatprep.subr.mxu0 %v445_v0  ;;  %356 = vmatpush3.msra.mxu1 %v153_v31 }
  0x3c   :  { %327 = vmatpush3.msra.mxu0 %v56_v18  ;;  %357 = vmatprep.subr.mxu1 %v445_v0 }
  0x3d   :  { %358 = vmatpush3.msra.mxu1 %v152_v36 }
  0x3e   :  { %359 = vmatprep.subr.mxu1 %v445_v0 }
  0x3f   :  { %360 = vmatpush3.msra.mxu1 %v151_v37 }
  0x40   :  { %361 = vmatprep.subr.mxu1 %v445_v0 }
  0x41   :  { %362 = vmatpush3.msra.mxu1 %v150_v38 }
  0xa8   :  { %v52_v32 = vpop.xlane.xlu0 %51 }
  0xa9   :  { %v53_v33 = vmax.f32 %v52_v32, 1e-24 }
  0xab   :  { %373 = vrsqrt.f32 %v53_v33 }
  0xb8   :  { %v374_v34 = vpop.eup %373 }
  0xb9   :  { %v55_v35 = vmul.f32 %v374_v34, %v489_v1 }
  0xbb   :  { %329 = vmatmul.mubr.f32.vlgmr.msra.gmra.mxu0 %v55_v35 }
 0x17b   :  { %v145_v40 = vpop.f32.mrf.mxu0 }
 0x17c   :  { %v146_v41 = vadd.f32 %v260_v39, %v145_v40 }
 0x17d   :  { %v330_v42 = vpop.f32.mrf.mxu0 }
 0x17e   :  { %v149_v43 = vmax.f32 %v146_v41, 0.0 }
 0x180   :  { %364 = vmatmul.mubr.f32.vlgmr.msra.gmra.mxu1 %v149_v43 }
 0x240   :  { %v239_v45 = vpop.f32.mrf.mxu1 }
 0x241   :  { %v240_v46 = vadd.f32 %v261_v44, %v239_v45 }
 0x242   :  { %v365_v47 = vpop.f32.mrf.mxu1 }
 0x243   :  { %243 = vst [vmem:[#allocation7] sm:$0xff] %v240_v46 }
 0x244   :  { %426 = shalt.err (!%p423_p0)
}
 0x245   :  { %253 = dma.vmem_to_hbm [thread:$0]  %s251_s9, 128, %s540_s5, [#allocation4]  }
 0x246   :  { %439 = dma.done.wait [#allocation4], 128  }
 0x247   :  { %440 = vsyncadd [#allocation4], 4294967168 }
 0x248   :  { %257 = vsyncpa [#allocation3], 1 }
 0x249   :  { %258 = vsyncpa [#allocation6], 1 }
 0x24a   :  { %259 = vsyncpa [#allocation4], 1 }

</bundles_post_ra>
